<compile_context>
chip_gen: v5e
topology: v5e:2x2
jax: 0.10.0
libtpu: 0.0.40
codegen_flags: <defaults>
</compile_context>

<pallas_src>
import functools

import jax
import jax.numpy as jnp
import numpy as np
from jax.experimental import pallas as pl
from jax.experimental.pallas import tpu as pltpu

EPS = 1e-5


# ----------------------------------------------------------------------------
# Fused Pallas kernel
# ----------------------------------------------------------------------------
def _bn_relu(h, gsum, gamma_wc, beta_wc, inv_count):
    """Training-mode BatchNorm + ReLU in the lane-dense (NH, W*C) layout.

    Row-reduce first (XLU), then the tiny (1,W*C)x(W*C,W*C) gsum matmul that
    sums the W lane-groups of each channel and re-broadcasts the per-channel
    result to every lane of that channel.  All statistics stay in f32.
    """
    s = jnp.sum(h, axis=0, keepdims=True)                              # (1, W*C)
    s2 = jnp.sum(h * h, axis=0, keepdims=True)                         # (1, W*C)
    mean = jnp.dot(s, gsum, preferred_element_type=jnp.float32) * inv_count
    ex2 = jnp.dot(s2, gsum, preferred_element_type=jnp.float32) * inv_count
    var = jnp.maximum(ex2 - mean * mean, 0.0)                          # clamp: no NaN from rounding
    scale = gamma_wc * jax.lax.rsqrt(var + EPS)
    shift = beta_wc - mean * scale
    return jnp.maximum(h * scale + shift, 0.0)


def _conv3x3_banded(h, w_ref, mask_up, mask_dn):
    """3x3 / pad=1 conv as 3 row-shifted banded matmuls (bf16 MXU operands).

    h: (NH, W*Cin) f32.  w_ref: (3, W*Cin, W*Cout) bf16 banded weights (x-taps
    and x-padding folded into the band structure).  mask_up / mask_dn:
    (NH, W*Cin) f32, zero rows that would read across an image boundary
    (y==0 / y==H-1), which also covers the roll wrap-around rows.
    """
    nh = h.shape[0]
    acc = jnp.dot(h.astype(jnp.bfloat16), w_ref[1],
                  preferred_element_type=jnp.float32)                   # dy = 0
    h_dn = (pltpu.roll(h, shift=nh - 1, axis=0) * mask_dn).astype(jnp.bfloat16)  # h[r+1]
    acc = acc + jnp.dot(h_dn, w_ref[2], preferred_element_type=jnp.float32)      # dy = +1
    h_up = (pltpu.roll(h, shift=1, axis=0) * mask_up).astype(jnp.bfloat16)       # h[r-1]
    acc = acc + jnp.dot(h_up, w_ref[0], preferred_element_type=jnp.float32)      # dy = -1
    return acc


def _genblock_kernel(x_ref, mup1_ref, mdn1_ref, mup2_ref, mdn2_ref,
                     g1_ref, be1_ref, gs1_ref, w1_ref, b1_ref,
                     g2_ref, be2_ref, gs2_ref, w2_ref, wsc_ref, b2_ref,
                     o_ref, *, inv_count):
    x = x_ref[...]                                      # (NH, W*Cin) f32

    # residual branch
    h = _bn_relu(x, gs1_ref[...], g1_ref[...], be1_ref[...], inv_count)          # BN1 + ReLU
    h1 = _conv3x3_banded(h, w1_ref, mup1_ref[...], mdn1_ref[...]) + b1_ref[...]  # conv1
    h2 = _bn_relu(h1, gs2_ref[...], g2_ref[...], be2_ref[...], inv_count)        # BN2 + ReLU
    out = _conv3x3_banded(h2, w2_ref, mup2_ref[...], mdn2_ref[...]) + b2_ref[...]  # conv2 (+b2+bsc)

    # learnable 1x1 shortcut (block-diagonal GEMM) + residual add
    out = out + jnp.dot(x.astype(jnp.bfloat16), wsc_ref[...],
                        preferred_element_type=jnp.float32)
    o_ref[...] = out


# ----------------------------------------------------------------------------
# Host-side, once-per-model parameter preparation (GEMM layouts, bf16 weights)
# ----------------------------------------------------------------------------
def _band3x3(w_oihw, W):
    """(O,I,3,3) -> (3, W*I, W*O): per-kernel-row banded matrices; x-taps and
    x zero-padding are encoded in the band structure."""
    O, I, KH, KW = w_oihw.shape
    w = np.asarray(w_oihw, np.float32)
    out = np.zeros((KH, W * I, W * O), np.float32)
    for kh in range(KH):
        for xo in range(W):
            for kw in range(KW):
                xi = xo + kw - 1
                if 0 <= xi < W:
                    out[kh, xi * I:(xi + 1) * I, xo * O:(xo + 1) * O] = w[:, :, kh, kw].T
    return out


def _blockdiag_1x1(wsc_oihw, W):
    """(O,I,1,1) -> (W*I, W*O) block-diagonal matrix for the 1x1 shortcut."""
    O, I = wsc_oihw.shape[0], wsc_oihw.shape[1]
    w = np.asarray(wsc_oihw, np.float32).reshape(O, I)
    out = np.zeros((W * I, W * O), np.float32)
    for x in range(W):
        out[x * I:(x + 1) * I, x * O:(x + 1) * O] = w.T
    return out


def prepare_params(params, N, H, W):
    """Convert PyTorch-layout params into lane-dense GEMM-layout operands.

    Called once, outside the jitted forward: hoists every weight transpose,
    the bf16 weight cast, bias pre-adds, and the full-width boundary masks."""
    cin = params["w1"].shape[1]
    chid = params["w1"].shape[0]
    cout = params["w2"].shape[0]
    g1 = np.asarray(params["g1"], np.float32).reshape(-1)
    be1 = np.asarray(params["be1"], np.float32).reshape(-1)
    g2 = np.asarray(params["g2"], np.float32).reshape(-1)
    be2 = np.asarray(params["be2"], np.float32).reshape(-1)
    b1 = np.asarray(params["b1"], np.float32).reshape(-1)
    b2 = np.asarray(params["b2"], np.float32).reshape(-1)
    bsc = np.asarray(params["bsc"], np.float32).reshape(-1)

    # full-lane-width boundary masks for the row-shifted conv taps
    NH = N * H
    row = np.arange(NH, dtype=np.int32) % H
    mu = (row != 0).astype(np.float32)[:, None]        # zero y==0 rows (and roll wrap)
    md = (row != H - 1).astype(np.float32)[:, None]    # zero y==H-1 rows (and roll wrap)

    prep = {
        # conv-tap boundary masks, pre-broadcast to each conv's input width
        "mu_cin": np.tile(mu, (1, W * cin)),
        "md_cin": np.tile(md, (1, W * cin)),
        "mu_chid": np.tile(mu, (1, W * chid)),
        "md_chid": np.tile(md, (1, W * chid)),
        # BN1 params (f32)
        "g1_wc": np.tile(g1, W).reshape(1, W * cin),
        "be1_wc": np.tile(be1, W).reshape(1, W * cin),
        "gsum1": np.tile(np.eye(cin, dtype=np.float32), (W, W)),
        # conv1 (bf16 banded weights, f32 bias)
        "w1_b": _band3x3(params["w1"], W).astype(jnp.bfloat16),
        "b1_wc": np.tile(b1, W).reshape(1, W * chid),
        # BN2 params (f32)
        "g2_wc": np.tile(g2, W).reshape(1, W * chid),
        "be2_wc": np.tile(be2, W).reshape(1, W * chid),
        "gsum2": np.tile(np.eye(chid, dtype=np.float32), (W, W)),
        # conv2 + 1x1 shortcut (bf16 weights), conv2+shortcut bias pre-added
        "w2_b": _band3x3(params["w2"], W).astype(jnp.bfloat16),
        "wsc_b": _blockdiag_1x1(params["wsc"], W).astype(jnp.bfloat16),
        "b2sc_wc": np.tile(b2 + bsc, W).reshape(1, W * cout),
    }
    return {k: jnp.asarray(v) for k, v in prep.items()}


# ----------------------------------------------------------------------------
# Forward: single fused, grid-less pallas_call on the lane-dense layout
# ----------------------------------------------------------------------------
@functools.partial(jax.jit, static_argnames=("n", "h", "w", "cout"))
def genblock_forward_2d(x2d, prep, *, n, h, w, cout):
    """x2d: (N*H, W*Cin) f32 lane-dense activations. Returns (N*H, W*Cout)."""
    NH = n * h
    args = (x2d,
            prep["mu_cin"], prep["md_cin"], prep["mu_chid"], prep["md_chid"],
            prep["g1_wc"], prep["be1_wc"], prep["gsum1"], prep["w1_b"], prep["b1_wc"],
            prep["g2_wc"], prep["be2_wc"], prep["gsum2"], prep["w2_b"],
            prep["wsc_b"], prep["b2sc_wc"])

    kernel = functools.partial(_genblock_kernel, inv_count=1.0 / float(n * h * w))

    return pl.pallas_call(
        kernel,
        out_shape=jax.ShapeDtypeStruct((NH, w * cout), jnp.float32),
        in_specs=[pl.BlockSpec(memory_space=pltpu.MemorySpace.VMEM) for _ in args],
        out_specs=pl.BlockSpec(memory_space=pltpu.MemorySpace.VMEM),
    )(*args)


def genblock_forward(x_nchw, prep, cout):
    """NCHW wrapper (matches the PyTorch module interface). In a full model,
    keep the lane-dense layout and call genblock_forward_2d directly to avoid
    the bracketing transposes."""
    N, Cin, H, W = x_nchw.shape
    x2d = jnp.transpose(x_nchw, (0, 2, 3, 1)).reshape(N * H, W * Cin)
    out2d = genblock_forward_2d(x2d, prep, n=N, h=H, w=W, cout=cout)
    return jnp.transpose(out2d.reshape(N, H, W, cout), (0, 3, 1, 2))


# ----------------------------------------------------------------------------
# Pure-JAX reference (mirrors the PyTorch forward, training-mode BN)
# ----------------------------------------------------------------------------
def genblock_reference(x, params):
    def bn(h, g, b):
        mean = h.mean(axis=(0, 2, 3), keepdims=True)
        var = ((h - mean) ** 2).mean(axis=(0, 2, 3), keepdims=True)
        return ((h - mean) / jnp.sqrt(var + EPS)) * g.reshape(1, -1, 1, 1) \
            + b.reshape(1, -1, 1, 1)

    def conv(h, w, b, pad):
        y = jax.lax.conv_general_dilated(
            h, w, (1, 1), [(pad, pad), (pad, pad)],
            dimension_numbers=("NCHW", "OIHW", "NCHW"))
        return y + b.reshape(1, -1, 1, 1)

    h = jnp.maximum(bn(x, params["g1"], params["be1"]), 0.0)
    h = conv(h, params["w1"], params["b1"], 1)
    h = jnp.maximum(bn(h, params["g2"], params["be2"]), 0.0)
    h = conv(h, params["w2"], params["b2"], 1)
    sc = conv(x, params["wsc"], params["bsc"], 0)
    return h + sc


# ----------------------------------------------------------------------------
def make_params(key, cin, chid, cout, ksize=3):
    ks = jax.random.split(key, 10)
    return {
        "g1": 1.0 + 0.05 * jax.random.normal(ks[0], (1, cin), jnp.float32),
        "be1": 0.05 * jax.random.normal(ks[1], (1, cin), jnp.float32),
        "g2": 1.0 + 0.05 * jax.random.normal(ks[2], (1, chid), jnp.float32),
        "be2": 0.05 * jax.random.normal(ks[3], (1, chid), jnp.float32),
        "w1": 0.1 * jax.random.normal(ks[4], (chid, cin, ksize, ksize), jnp.float32),
        "b1": 0.1 * jax.random.normal(ks[5], (1, chid), jnp.float32),
        "w2": 0.1 * jax.random.normal(ks[6], (cout, chid, ksize, ksize), jnp.float32),
        "b2": 0.1 * jax.random.normal(ks[7], (1, cout), jnp.float32),
        "wsc": 0.1 * jax.random.normal(ks[8], (cout, cin, 1, 1), jnp.float32),
        "bsc": 0.1 * jax.random.normal(ks[9], (1, cout), jnp.float32),
    }


if __name__ == "__main__":
    key = jax.random.PRNGKey(0)
    kx, kp = jax.random.split(key)

    N, Cin, H, W = 2, 4, 16, 16
    Chid = Cout = 8

    x = jax.random.normal(kx, (N, Cin, H, W), jnp.float32)
    params = make_params(kp, Cin, Chid, Cout)
    prep = prepare_params(params, N, H, W)     # one-time GEMM-layout / bf16 conversion

    out = genblock_forward(x, prep, Cout)
    out = jax.block_until_ready(out)

    ref = genblock_reference(
        x,
        {k: (v.reshape(-1) if k in ("g1", "be1", "g2", "be2", "b1", "b2", "bsc")
             else v) for k, v in params.items()},
    )
    ref = jax.block_until_ready(ref)

    assert out.shape == (N, Cout, H, W), out.shape
    # Tolerance relaxed from 2e-3 (pure f32) to 1e-2 because conv / shortcut
    # matmul operands are rounded to bf16 for the MXU (stats stay f32).
    np.testing.assert_allclose(np.asarray(out), np.asarray(ref),
                               rtol=1e-2, atol=1e-2)
    print("KERNEL_OK")
</pallas_src>

<mosaic_0001>
module attributes {stable_mosaic.version = 11 : i64} {
  func.func @_genblock_kernel(%arg0: memref<32x64xf32, #tpu.memory_space<vmem>>, %arg1: memref<32x64xf32, #tpu.memory_space<vmem>>, %arg2: memref<32x64xf32, #tpu.memory_space<vmem>>, %arg3: memref<32x128xf32, #tpu.memory_space<vmem>>, %arg4: memref<32x128xf32, #tpu.memory_space<vmem>>, %arg5: memref<1x64xf32, #tpu.memory_space<vmem>>, %arg6: memref<1x64xf32, #tpu.memory_space<vmem>>, %arg7: memref<64x64xf32, #tpu.memory_space<vmem>>, %arg8: memref<3x64x128xbf16, #tpu.memory_space<vmem>>, %arg9: memref<1x128xf32, #tpu.memory_space<vmem>>, %arg10: memref<1x128xf32, #tpu.memory_space<vmem>>, %arg11: memref<1x128xf32, #tpu.memory_space<vmem>>, %arg12: memref<128x128xf32, #tpu.memory_space<vmem>>, %arg13: memref<3x128x128xbf16, #tpu.memory_space<vmem>>, %arg14: memref<64x128xbf16, #tpu.memory_space<vmem>>, %arg15: memref<1x128xf32, #tpu.memory_space<vmem>>, %arg16: memref<32x128xf32, #tpu.memory_space<vmem>>) attributes {dimension_semantics = [], scalar_prefetch = 0 : i64, scratch_operands = 0 : i64, tpu.core_type = #tpu.core_type<tc>} {
    %c0 = arith.constant 0 : index
    %c0_0 = arith.constant 0 : index
    %0 = vector.load %arg0[%c0, %c0_0] : memref<32x64xf32, #tpu.memory_space<vmem>>, vector<32x64xf32>
    %c0_1 = arith.constant 0 : index
    %c0_2 = arith.constant 0 : index
    %1 = vector.load %arg7[%c0_1, %c0_2] : memref<64x64xf32, #tpu.memory_space<vmem>>, vector<64x64xf32>
    %c0_3 = arith.constant 0 : index
    %c0_4 = arith.constant 0 : index
    %2 = vector.load %arg5[%c0_3, %c0_4] : memref<1x64xf32, #tpu.memory_space<vmem>>, vector<1x64xf32>
    %c0_5 = arith.constant 0 : index
    %c0_6 = arith.constant 0 : index
    %3 = vector.load %arg6[%c0_5, %c0_6] : memref<1x64xf32, #tpu.memory_space<vmem>>, vector<1x64xf32>
    %cst = arith.constant dense<0.000000e+00> : vector<64xf32>
    %4 = vector.multi_reduction <add>, %0, %cst [0] : vector<32x64xf32> to vector<64xf32>
    %5 = vector.shape_cast %4 : vector<64xf32> to vector<1x64xf32>
    %6 = arith.mulf %0, %0 : vector<32x64xf32>
    %cst_7 = arith.constant dense<0.000000e+00> : vector<64xf32>
    %7 = vector.multi_reduction <add>, %6, %cst_7 [0] : vector<32x64xf32> to vector<64xf32>
    %8 = vector.shape_cast %7 : vector<64xf32> to vector<1x64xf32>
    %cst_8 = arith.constant dense<0.000000e+00> : vector<1x64xf32>
    %9 = tpu.matmul %5, %1, %cst_8 {dimension_numbers = #tpu.dot_dimension_numbers<[1], [0], [0], [1], [0, 0, 1, 1], [], []>} : vector<1x64xf32>, vector<64x64xf32>, vector<1x64xf32> -> vector<1x64xf32>
    %cst_9 = arith.constant 0.001953125 : f32
    %10 = vector.broadcast %cst_9 : f32 to vector<1x64xf32>
    %11 = arith.mulf %9, %10 : vector<1x64xf32>
    %cst_10 = arith.constant dense<0.000000e+00> : vector<1x64xf32>
    %12 = tpu.matmul %8, %1, %cst_10 {dimension_numbers = #tpu.dot_dimension_numbers<[1], [0], [0], [1], [0, 0, 1, 1], [], []>} : vector<1x64xf32>, vector<64x64xf32>, vector<1x64xf32> -> vector<1x64xf32>
    %cst_11 = arith.constant 0.001953125 : f32
    %13 = vector.broadcast %cst_11 : f32 to vector<1x64xf32>
    %14 = arith.mulf %12, %13 : vector<1x64xf32>
    %15 = arith.mulf %11, %11 : vector<1x64xf32>
    %16 = arith.subf %14, %15 : vector<1x64xf32>
    %cst_12 = arith.constant 0.000000e+00 : f32
    %17 = vector.broadcast %cst_12 : f32 to vector<1x64xf32>
    %18 = arith.maximumf %16, %17 : vector<1x64xf32>
    %cst_13 = arith.constant 9.99999974E-6 : f32
    %19 = vector.broadcast %cst_13 : f32 to vector<1x64xf32>
    %20 = arith.addf %18, %19 : vector<1x64xf32>
    %21 = math.rsqrt %20 : vector<1x64xf32>
    %22 = arith.mulf %2, %21 : vector<1x64xf32>
    %23 = arith.mulf %11, %22 : vector<1x64xf32>
    %24 = arith.subf %3, %23 : vector<1x64xf32>
    %25 = vector.broadcast %22 : vector<1x64xf32> to vector<32x64xf32>
    %26 = arith.mulf %0, %25 : vector<32x64xf32>
    %27 = vector.broadcast %24 : vector<1x64xf32> to vector<32x64xf32>
    %28 = arith.addf %26, %27 : vector<32x64xf32>
    %cst_14 = arith.constant 0.000000e+00 : f32
    %29 = vector.broadcast %cst_14 : f32 to vector<32x64xf32>
    %30 = arith.maximumf %28, %29 : vector<32x64xf32>
    %c0_15 = arith.constant 0 : index
    %c0_16 = arith.constant 0 : index
    %31 = vector.load %arg1[%c0_15, %c0_16] : memref<32x64xf32, #tpu.memory_space<vmem>>, vector<32x64xf32>
    %c0_17 = arith.constant 0 : index
    %c0_18 = arith.constant 0 : index
    %32 = vector.load %arg2[%c0_17, %c0_18] : memref<32x64xf32, #tpu.memory_space<vmem>>, vector<32x64xf32>
    %33 = arith.truncf %30 : vector<32x64xf32> to vector<32x64xbf16>
    %c1 = arith.constant 1 : index
    %c0_19 = arith.constant 0 : index
    %c0_20 = arith.constant 0 : index
    %34 = vector.load %arg8[%c1, %c0_19, %c0_20] : memref<3x64x128xbf16, #tpu.memory_space<vmem>>, vector<1x64x128xbf16>
    %35 = vector.shape_cast %34 : vector<1x64x128xbf16> to vector<64x128xbf16>
    %cst_21 = arith.constant dense<0.000000e+00> : vector<32x128xf32>
    %36 = tpu.matmul %33, %35, %cst_21 {dimension_numbers = #tpu.dot_dimension_numbers<[1], [0], [0], [1], [0, 0, 1, 1], [], []>} : vector<32x64xbf16>, vector<64x128xbf16>, vector<32x128xf32> -> vector<32x128xf32>
    %c31_i32 = arith.constant 31 : i32
    %37 = tpu.dynamic_rotate %30 by %c31_i32 dim 0 : vector<32x64xf32>, i32 -> vector<32x64xf32>
    %38 = arith.mulf %37, %32 : vector<32x64xf32>
    %39 = arith.truncf %38 : vector<32x64xf32> to vector<32x64xbf16>
    %c2 = arith.constant 2 : index
    %c0_22 = arith.constant 0 : index
    %c0_23 = arith.constant 0 : index
    %40 = vector.load %arg8[%c2, %c0_22, %c0_23] : memref<3x64x128xbf16, #tpu.memory_space<vmem>>, vector<1x64x128xbf16>
    %41 = vector.shape_cast %40 : vector<1x64x128xbf16> to vector<64x128xbf16>
    %cst_24 = arith.constant dense<0.000000e+00> : vector<32x128xf32>
    %42 = tpu.matmul %39, %41, %cst_24 {dimension_numbers = #tpu.dot_dimension_numbers<[1], [0], [0], [1], [0, 0, 1, 1], [], []>} : vector<32x64xbf16>, vector<64x128xbf16>, vector<32x128xf32> -> vector<32x128xf32>
    %43 = arith.addf %36, %42 : vector<32x128xf32>
    %c1_i32 = arith.constant 1 : i32
    %44 = tpu.dynamic_rotate %30 by %c1_i32 dim 0 : vector<32x64xf32>, i32 -> vector<32x64xf32>
    %45 = arith.mulf %44, %31 : vector<32x64xf32>
    %46 = arith.truncf %45 : vector<32x64xf32> to vector<32x64xbf16>
    %c0_25 = arith.constant 0 : index
    %c0_26 = arith.constant 0 : index
    %c0_27 = arith.constant 0 : index
    %47 = vector.load %arg8[%c0_25, %c0_26, %c0_27] : memref<3x64x128xbf16, #tpu.memory_space<vmem>>, vector<1x64x128xbf16>
    %48 = vector.shape_cast %47 : vector<1x64x128xbf16> to vector<64x128xbf16>
    %cst_28 = arith.constant dense<0.000000e+00> : vector<32x128xf32>
    %49 = tpu.matmul %46, %48, %cst_28 {dimension_numbers = #tpu.dot_dimension_numbers<[1], [0], [0], [1], [0, 0, 1, 1], [], []>} : vector<32x64xbf16>, vector<64x128xbf16>, vector<32x128xf32> -> vector<32x128xf32>
    %50 = arith.addf %43, %49 : vector<32x128xf32>
    %c0_29 = arith.constant 0 : index
    %c0_30 = arith.constant 0 : index
    %51 = vector.load %arg9[%c0_29, %c0_30] : memref<1x128xf32, #tpu.memory_space<vmem>>, vector<1x128xf32>
    %52 = vector.broadcast %51 : vector<1x128xf32> to vector<32x128xf32>
    %53 = arith.addf %50, %52 : vector<32x128xf32>
    %c0_31 = arith.constant 0 : index
    %c0_32 = arith.constant 0 : index
    %54 = vector.load %arg12[%c0_31, %c0_32] : memref<128x128xf32, #tpu.memory_space<vmem>>, vector<128x128xf32>
    %c0_33 = arith.constant 0 : index
    %c0_34 = arith.constant 0 : index
    %55 = vector.load %arg10[%c0_33, %c0_34] : memref<1x128xf32, #tpu.memory_space<vmem>>, vector<1x128xf32>
    %c0_35 = arith.constant 0 : index
    %c0_36 = arith.constant 0 : index
    %56 = vector.load %arg11[%c0_35, %c0_36] : memref<1x128xf32, #tpu.memory_space<vmem>>, vector<1x128xf32>
    %cst_37 = arith.constant dense<0.000000e+00> : vector<128xf32>
    %57 = vector.multi_reduction <add>, %53, %cst_37 [0] : vector<32x128xf32> to vector<128xf32>
    %58 = vector.shape_cast %57 : vector<128xf32> to vector<1x128xf32>
    %59 = arith.mulf %53, %53 : vector<32x128xf32>
    %cst_38 = arith.constant dense<0.000000e+00> : vector<128xf32>
    %60 = vector.multi_reduction <add>, %59, %cst_38 [0] : vector<32x128xf32> to vector<128xf32>
    %61 = vector.shape_cast %60 : vector<128xf32> to vector<1x128xf32>
    %cst_39 = arith.constant dense<0.000000e+00> : vector<1x128xf32>
    %62 = tpu.matmul %58, %54, %cst_39 {dimension_numbers = #tpu.dot_dimension_numbers<[1], [0], [0], [1], [0, 0, 1, 1], [], []>} : vector<1x128xf32>, vector<128x128xf32>, vector<1x128xf32> -> vector<1x128xf32>
    %cst_40 = arith.constant 0.001953125 : f32
    %63 = vector.broadcast %cst_40 : f32 to vector<1x128xf32>
    %64 = arith.mulf %62, %63 : vector<1x128xf32>
    %cst_41 = arith.constant dense<0.000000e+00> : vector<1x128xf32>
    %65 = tpu.matmul %61, %54, %cst_41 {dimension_numbers = #tpu.dot_dimension_numbers<[1], [0], [0], [1], [0, 0, 1, 1], [], []>} : vector<1x128xf32>, vector<128x128xf32>, vector<1x128xf32> -> vector<1x128xf32>
    %cst_42 = arith.constant 0.001953125 : f32
    %66 = vector.broadcast %cst_42 : f32 to vector<1x128xf32>
    %67 = arith.mulf %65, %66 : vector<1x128xf32>
    %68 = arith.mulf %64, %64 : vector<1x128xf32>
    %69 = arith.subf %67, %68 : vector<1x128xf32>
    %cst_43 = arith.constant 0.000000e+00 : f32
    %70 = vector.broadcast %cst_43 : f32 to vector<1x128xf32>
    %71 = arith.maximumf %69, %70 : vector<1x128xf32>
    %cst_44 = arith.constant 9.99999974E-6 : f32
    %72 = vector.broadcast %cst_44 : f32 to vector<1x128xf32>
    %73 = arith.addf %71, %72 : vector<1x128xf32>
    %74 = math.rsqrt %73 : vector<1x128xf32>
    %75 = arith.mulf %55, %74 : vector<1x128xf32>
    %76 = arith.mulf %64, %75 : vector<1x128xf32>
    %77 = arith.subf %56, %76 : vector<1x128xf32>
    %78 = vector.broadcast %75 : vector<1x128xf32> to vector<32x128xf32>
    %79 = arith.mulf %53, %78 : vector<32x128xf32>
    %80 = vector.broadcast %77 : vector<1x128xf32> to vector<32x128xf32>
    %81 = arith.addf %79, %80 : vector<32x128xf32>
    %cst_45 = arith.constant 0.000000e+00 : f32
    %82 = vector.broadcast %cst_45 : f32 to vector<32x128xf32>
    %83 = arith.maximumf %81, %82 : vector<32x128xf32>
    %c0_46 = arith.constant 0 : index
    %c0_47 = arith.constant 0 : index
    %84 = vector.load %arg3[%c0_46, %c0_47] : memref<32x128xf32, #tpu.memory_space<vmem>>, vector<32x128xf32>
    %c0_48 = arith.constant 0 : index
    %c0_49 = arith.constant 0 : index
    %85 = vector.load %arg4[%c0_48, %c0_49] : memref<32x128xf32, #tpu.memory_space<vmem>>, vector<32x128xf32>
    %86 = arith.truncf %83 : vector<32x128xf32> to vector<32x128xbf16>
    %c1_50 = arith.constant 1 : index
    %c0_51 = arith.constant 0 : index
    %c0_52 = arith.constant 0 : index
    %87 = vector.load %arg13[%c1_50, %c0_51, %c0_52] : memref<3x128x128xbf16, #tpu.memory_space<vmem>>, vector<1x128x128xbf16>
    %88 = vector.shape_cast %87 : vector<1x128x128xbf16> to vector<128x128xbf16>
    %cst_53 = arith.constant dense<0.000000e+00> : vector<32x128xf32>
    %89 = tpu.matmul %86, %88, %cst_53 {dimension_numbers = #tpu.dot_dimension_numbers<[1], [0], [0], [1], [0, 0, 1, 1], [], []>} : vector<32x128xbf16>, vector<128x128xbf16>, vector<32x128xf32> -> vector<32x128xf32>
    %c31_i32_54 = arith.constant 31 : i32
    %90 = tpu.dynamic_rotate %83 by %c31_i32_54 dim 0 : vector<32x128xf32>, i32 -> vector<32x128xf32>
    %91 = arith.mulf %90, %85 : vector<32x128xf32>
    %92 = arith.truncf %91 : vector<32x128xf32> to vector<32x128xbf16>
    %c2_55 = arith.constant 2 : index
    %c0_56 = arith.constant 0 : index
    %c0_57 = arith.constant 0 : index
    %93 = vector.load %arg13[%c2_55, %c0_56, %c0_57] : memref<3x128x128xbf16, #tpu.memory_space<vmem>>, vector<1x128x128xbf16>
    %94 = vector.shape_cast %93 : vector<1x128x128xbf16> to vector<128x128xbf16>
    %cst_58 = arith.constant dense<0.000000e+00> : vector<32x128xf32>
    %95 = tpu.matmul %92, %94, %cst_58 {dimension_numbers = #tpu.dot_dimension_numbers<[1], [0], [0], [1], [0, 0, 1, 1], [], []>} : vector<32x128xbf16>, vector<128x128xbf16>, vector<32x128xf32> -> vector<32x128xf32>
    %96 = arith.addf %89, %95 : vector<32x128xf32>
    %c1_i32_59 = arith.constant 1 : i32
    %97 = tpu.dynamic_rotate %83 by %c1_i32_59 dim 0 : vector<32x128xf32>, i32 -> vector<32x128xf32>
    %98 = arith.mulf %97, %84 : vector<32x128xf32>
    %99 = arith.truncf %98 : vector<32x128xf32> to vector<32x128xbf16>
    %c0_60 = arith.constant 0 : index
    %c0_61 = arith.constant 0 : index
    %c0_62 = arith.constant 0 : index
    %100 = vector.load %arg13[%c0_60, %c0_61, %c0_62] : memref<3x128x128xbf16, #tpu.memory_space<vmem>>, vector<1x128x128xbf16>
    %101 = vector.shape_cast %100 : vector<1x128x128xbf16> to vector<128x128xbf16>
    %cst_63 = arith.constant dense<0.000000e+00> : vector<32x128xf32>
    %102 = tpu.matmul %99, %101, %cst_63 {dimension_numbers = #tpu.dot_dimension_numbers<[1], [0], [0], [1], [0, 0, 1, 1], [], []>} : vector<32x128xbf16>, vector<128x128xbf16>, vector<32x128xf32> -> vector<32x128xf32>
    %103 = arith.addf %96, %102 : vector<32x128xf32>
    %c0_64 = arith.constant 0 : index
    %c0_65 = arith.constant 0 : index
    %104 = vector.load %arg15[%c0_64, %c0_65] : memref<1x128xf32, #tpu.memory_space<vmem>>, vector<1x128xf32>
    %105 = vector.broadcast %104 : vector<1x128xf32> to vector<32x128xf32>
    %106 = arith.addf %103, %105 : vector<32x128xf32>
    %107 = arith.truncf %0 : vector<32x64xf32> to vector<32x64xbf16>
    %c0_66 = arith.constant 0 : index
    %c0_67 = arith.constant 0 : index
    %108 = vector.load %arg14[%c0_66, %c0_67] : memref<64x128xbf16, #tpu.memory_space<vmem>>, vector<64x128xbf16>
    %cst_68 = arith.constant dense<0.000000e+00> : vector<32x128xf32>
    %109 = tpu.matmul %107, %108, %cst_68 {dimension_numbers = #tpu.dot_dimension_numbers<[1], [0], [0], [1], [0, 0, 1, 1], [], []>} : vector<32x64xbf16>, vector<64x128xbf16>, vector<32x128xf32> -> vector<32x128xf32>
    %110 = arith.addf %106, %109 : vector<32x128xf32>
    %c0_69 = arith.constant 0 : index
    %c0_70 = arith.constant 0 : index
    %111 = vector.load %arg16[%c0_69, %c0_70] : memref<32x128xf32, #tpu.memory_space<vmem>>, vector<32x128xf32>
    tpu.vector_store %arg16[%c0_69, %c0_70], %110 {strides = array<i32>} : memref<32x128xf32, #tpu.memory_space<vmem>>, vector<32x128xf32>,
    return
  }
}

</mosaic_0001>

<bundles_post_ra>
// kernel: genblock_forward_2d.1
= control target key start
LH: loop header
LB: loop body
LE: loop exit
PB: predicated region body
PF: predicated region fallthrough
CT: control target
= control target key end

     0   :  { %s1995_s0 = inlined_call_operand.hbm [shape: f32[32,64], index: 0, kind: input, shape index: {}]   ;;  %s1996_s1 = inlined_call_operand.hbm [shape: f32[32,64], index: 1, kind: input, shape index: {}]   ;;  %s1997_s2 = inlined_call_operand.hbm [shape: f32[32,64], index: 2, kind: input, shape index: {}]   ;;  %s1998_s3 = inlined_call_operand.hbm [shape: f32[32,128], index: 3, kind: input, shape index: {}]   ;;  %s1999_s4 = inlined_call_operand.hbm [shape: f32[32,128], index: 4, kind: input, shape index: {}]   ;;  %s2000_s5 = inlined_call_operand.vmem [shape: f32[1,64], index: 5, kind: input, shape index: {}]   ;;  %s2001_s6 = inlined_call_operand.vmem [shape: f32[1,64], index: 6, kind: input, shape index: {}]   ;;  %s2002_s7 = inlined_call_operand.hbm [shape: f32[64,64], index: 7, kind: input, shape index: {}]   ;;  %s2003_s8 = inlined_call_operand.hbm [shape: bf16[3,64,128], index: 8, kind: input, shape index: {}]   ;;  %s2004_s9 = inlined_call_operand.hbm [shape: f32[1,128], index: 9, kind: input, shape index: {}]   ;;  %s2005_s10 = inlined_call_operand.vmem [shape: f32[1,128], index: 10, kind: input, shape index: {}]   ;;  %s2006_s11 = inlined_call_operand.hbm [shape: f32[1,128], index: 11, kind: input, shape index: {}]   ;;  %s2007_s12 = inlined_call_operand.hbm [shape: f32[128,128], index: 12, kind: input, shape index: {}]   ;;  %s2008_s13 = inlined_call_operand.hbm [shape: bf16[3,128,128], index: 13, kind: input, shape index: {}]   ;;  %s2009_s14 = inlined_call_operand.hbm [shape: bf16[64,128], index: 14, kind: input, shape index: {}]   ;;  %s2010_s15 = inlined_call_operand.hbm [shape: f32[1,128], index: 15, kind: input, shape index: {}]   ;;  %s2011_s16 = inlined_call_operand.hbm [shape: f32[32,128], index: 16, kind: output, shape index: {}]  }
   0x1   :  { %2012 = sst [smem:[#allocation32_spill]] %s1995_s0 }
   0x2   :  { %21 = vsyncpa [#allocation3], 0 }
   0x3   :  { %22 = vsyncpa [#allocation6], 0 }
   0x4   :  { %23 = vsyncpa [#allocation9], 0 }
   0x5   :  { %24 = vsyncpa [#allocation12], 0 }
   0x6   :  { %25 = vsyncpa [#allocation15], 0 }
   0x7   :  { %26 = vsyncpa [#allocation18], 0 }
   0x8   :  { %27 = vsyncpa [#allocation21], 0 }
   0x9   :  { %28 = vsyncpa [#allocation4], 0  ;;  %s46_s23 = sshll.u32 %s1996_s1, 4  ;;  %s1702_s24 = smov [#allocation5]   ;;  %s47_s23 = int_to_ptr.hbm [resolvable:$true] %s46_s23 }
   0xa   :  { %s48_s25 = sshll.u32 %s1702_s24, 4  ;;  %s72_s28 = sshll.u32 %s1998_s3, 4  ;;  %s49_s25 = int_to_ptr.vmem [resolvable:$true] %s48_s25  ;;  %s73_s28 = int_to_ptr.hbm [resolvable:$true] %s72_s28 }
   0xb   :  { %s1703_s29 = smov 128   ;;  %s1704_s30 = smov 8  }
   0xc   :  { %54 = dma.hbm_to_vmem [thread:$0]  %s47_s23, 512, %s49_s25, [#allocation6], %s1703_s29, %s1703_s29, %s1704_s30  }
   0xd   :  { %s1705_s0 = smov [#allocation8]   ;;  %s102_s1 = sshll.u32 %s2002_s7, 4  ;;  %s103_s1 = int_to_ptr.hbm [resolvable:$true] %s102_s1 }
   0xe   :  { %s74_s17 = sshll.u32 %s1705_s0, 4  ;;  %s129_s21 = sshll.u32 %s2004_s9, 4  ;;  %s75_s17 = int_to_ptr.vmem [resolvable:$true] %s74_s17  ;;  %s130_s21 = int_to_ptr.hbm [resolvable:$true] %s129_s21 }
   0xf   :  { %80 = dma.hbm_to_vmem [thread:$0]  %s73_s28, 512, %s75_s17, [#allocation9], %s1703_s29, %s1703_s29, %s1704_s30  }
  0x10   :  { %s1706_s22 = smov [#allocation11]   ;;  %s1707_s23 = smov [#allocation14]  }
  0x11   :  { %s104_s24 = sshll.u32 %s1706_s22, 4  ;;  %s131_s7 = sshll.u32 %s1707_s23, 4  ;;  %s105_s24 = int_to_ptr.vmem [resolvable:$true] %s104_s24  ;;  %s132_s7 = int_to_ptr.vmem [resolvable:$true] %s131_s7 }
  0x12   :  { %110 = dma.hbm_to_vmem [thread:$0]  %s103_s1, 1024, %s105_s24, [#allocation12], %s1703_s29, %s1703_s29, %s1704_s30  }
  0x13   :  { %s152_s27 = sshll.u32 %s2007_s12, 4  ;;  %s1708_s28 = smov [#allocation17]   ;;  %s153_s27 = int_to_ptr.hbm [resolvable:$true] %s152_s27 }
  0x14   :  { %134 = dma.hbm_to_vmem [thread:$0]  %s130_s21, 16, %s132_s7, [#allocation15]  }
  0x15   :  { %s154_s0 = sshll.u32 %s1708_s28, 4  ;;  %s178_s18 = sshll.u32 %s2009_s14, 4  ;;  %s155_s0 = int_to_ptr.vmem [resolvable:$true] %s154_s0  ;;  %s179_s18 = int_to_ptr.hbm [resolvable:$true] %s178_s18 }
  0x16   :  { %160 = dma.hbm_to_vmem [thread:$0]  %s153_s27, 2048, %s155_s0, [#allocation18], %s1703_s29, %s1703_s29, %s1704_s30  }
  0x17   :  { %s1709_s19 = smov [#allocation20]   ;;  %s2013_s12 = sld [smem:[#allocation32_spill]] }
  0x18   :  { %s180_s1 = sshll.u32 %s1709_s19, 4  ;;  %s1710_s21 = smov 64   ;;  %s181_s1 = int_to_ptr.vmem [resolvable:$true] %s180_s1 }
  0x19   :  { %s1711_s24 = smov 4   ;;  %s59_s7 = sshll.u32 %s1997_s2, 4  ;;  %s60_s7 = int_to_ptr.hbm [resolvable:$true] %s59_s7 }
  0x1a   :  { %186 = dma.hbm_to_vmem [thread:$0]  %s179_s18, 512, %s181_s1, [#allocation21], %s1710_s21, %s1710_s21, %s1711_s24  }
  0x1b   :  { %s1712_s25 = smov [#allocation2]   ;;  %s1713_s27 = smov [#allocation7]  }
  0x1c   :  { %s35_s26 = sshll.u32 %s1712_s25, 4  ;;  %s61_s28 = sshll.u32 %s1713_s27, 4  ;;  %s36_s26 = int_to_ptr.vmem [resolvable:$true] %s35_s26  ;;  %s62_s28 = int_to_ptr.vmem [resolvable:$true] %s61_s28 }
  0x1d   :  { %s33_s22 = sshll.u32 %s2013_s12, 4  ;;  %s85_s17 = sshll.u32 %s1999_s4, 4  ;;  %s34_s22 = int_to_ptr.hbm [resolvable:$true] %s33_s22  ;;  %s86_s17 = int_to_ptr.hbm [resolvable:$true] %s85_s17 }
  0x1e   :  { %41 = dma.hbm_to_vmem [thread:$0]  %s34_s22, 512, %s36_s26, [#allocation3], %s1703_s29, %s1703_s29, %s1704_s30  }
  0x1f   :  { %67 = dma.hbm_to_vmem [thread:$0]  %s60_s7, 512, %s62_s28, [#allocation6], %s1703_s29, %s1703_s29, %s1704_s30  }
  0x20   :  { %s115_s19 = sshll.u32 %s2003_s8, 4  ;;  %s1714_s1 = smov [#allocation10]   ;;  %s116_s19 = int_to_ptr.hbm [resolvable:$true] %s115_s19 }
  0x21   :  { %s87_s3 = sshll.u32 %s1714_s1, 4  ;;  %s1715_s20 = smov [#allocation13]   ;;  %s88_s3 = int_to_ptr.vmem [resolvable:$true] %s87_s3 }
  0x22   :  { %93 = dma.hbm_to_vmem [thread:$0]  %s86_s17, 512, %s88_s3, [#allocation9], %s1703_s29, %s1703_s29, %s1704_s30  }
  0x23   :  { %s117_s4 = sshll.u32 %s1715_s20, 4  ;;  %s142_s14 = sshll.u32 %s2006_s11, 4  ;;  %s118_s4 = int_to_ptr.vmem [resolvable:$true] %s117_s4  ;;  %s143_s14 = int_to_ptr.hbm [resolvable:$true] %s142_s14 }
  0x24   :  { %123 = dma.hbm_to_vmem [thread:$0]  %s116_s19, 1536, %s118_s4, [#allocation12], %s1710_s21, %s1710_s21, %s1711_s24  }
  0x25   :  { %s165_s7 = sshll.u32 %s2008_s13, 4  ;;  %s1716_s25 = smov [#allocation16]   ;;  %s166_s7 = int_to_ptr.hbm [resolvable:$true] %s165_s7 }
  0x26   :  { %s144_s26 = sshll.u32 %s1716_s25, 4  ;;  %s1717_s27 = smov [#allocation19]   ;;  %s145_s26 = int_to_ptr.vmem [resolvable:$true] %s144_s26 }
  0x27   :  { %147 = dma.hbm_to_vmem [thread:$0]  %s143_s14, 16, %s145_s26, [#allocation15]  }
  0x28   :  { %s167_s28 = sshll.u32 %s1717_s27, 4  ;;  %s192_s11 = sshll.u32 %s2010_s15, 4  ;;  %s168_s28 = int_to_ptr.vmem [resolvable:$true] %s167_s28  ;;  %s193_s11 = int_to_ptr.hbm [resolvable:$true] %s192_s11 }
  0x29   :  { %173 = dma.hbm_to_vmem [thread:$0]  %s166_s7, 3072, %s168_s28, [#allocation18], %s1710_s21, %s1710_s21, %s1711_s24  }
  0x2a   :  { %s1718_s17 = smov [#allocation22]  }
  0x2b   :  { %s194_s2 = sshll.u32 %s1718_s17, 4  ;;  %s195_s2 = int_to_ptr.vmem [resolvable:$true] %s194_s2 }
  0x2c   :  { %197 = dma.hbm_to_vmem [thread:$0]  %s193_s11, 16, %s195_s2, [#allocation21]  }
  0x2d   :  { %1686 = dma.done.wait [#allocation3], 512  }
  0x2e   :  { %1687 = vsyncadd [#allocation3], 4294966784 }
  0x2f   :  { %1688 = dma.done.wait [#allocation6], 1024  }
  0x30   :  { %1689 = vsyncadd [#allocation6], 4294966272 }
  0x31   :  { %1690 = dma.done.wait [#allocation9], 1024  }
  0x32   :  { %1691 = vsyncadd [#allocation9], 4294966272 }
  0x33   :  { %1692 = dma.done.wait [#allocation12], 2560  }
  0x34   :  { %1693 = vsyncadd [#allocation12], 4294964736 }
  0x35   :  { %1694 = dma.done.wait [#allocation15], 32  }
  0x36   :  { %1695 = vsyncadd [#allocation15], 4294967264 }
  0x37   :  { %1696 = dma.done.wait [#allocation18], 5120  }
  0x38   :  { %1697 = vsyncadd [#allocation18], 4294962176 }
  0x39   :  { %1698 = dma.done.wait [#allocation21], 528  }
  0x3a   :  { %1699 = vsyncadd [#allocation21], 4294966768  ;;  %v262_v0 = vld [vmem:[#allocation11 + $0x38] sm:$0xff]  ;;  %v261_v1 = vld [vmem:[#allocation11 + $0x30] sm:$0xff]  ;;  %vm265_vm0 = vcmask 523264   ;;  %s1097_s3 = sshll.u32 %s2011_s16, 4  ;;  %s1098_s3 = int_to_ptr.hbm [resolvable:$true] %s1097_s3 }
  0x3b   :  { %331 = vmatpush.msra.mxu3 %v262_v0  ;;  %307 = vmatpush.msra.mxu0 %v262_v0  ;;  %v260_v2 = vld [vmem:[#allocation11 + $0x28] sm:$0xff]  ;;  %v1874_v3 = vld [vmem:[#allocation2] sm:$0xff]  ;;  %v1878_v5 = vld [vmem:[#allocation2 + $0x10] sm:$0xff] }
  0x3c   :  { %v1876_v4 = vld [vmem:[#allocation2 + $0x8] sm:$0xff]  ;;  %v1880_v6 = vld [vmem:[#allocation2 + $0x18] sm:$0xff]  ;;  %v279_v7 = vmul.f32 %v1874_v3, %v1874_v3  ;;  %v266_v8 = vsel %vm265_vm0, %v1874_v3, 0.0  ;;  %v259_v9 = vld [vmem:[#allocation11 + $0x20] sm:$0xff]  ;;  %v281_v11 = vmul.f32 %v1878_v5, %v1878_v5  ;;  %v269_v16 = vsel %vm265_vm0, %v1878_v5, 0.0 }
  0x3d   :  { %332 = vmatpush.msra.mxu3 %v261_v1  ;;  %308 = vmatpush.msra.mxu0 %v261_v1  ;;  %v280_v10 = vmul.f32 %v1876_v4, %v1876_v4  ;;  %v282_v12 = vmul.f32 %v1880_v6, %v1880_v6  ;;  %v267_v13 = vsel %vm265_vm0, %v1876_v4, 0.0  ;;  %v258_v17 = vld [vmem:[#allocation11 + $0x18] sm:$0xff]  ;;  %v271_v20 = vsel %vm265_vm0, %v1880_v6, 0.0  ;;  %v257_v23 = vld [vmem:[#allocation11 + $0x10] sm:$0xff]  ;;  %v256_v27 = vld [vmem:[#allocation11 + $0x8] sm:$0xff] }
  0x3e   :  { %v283_v14 = vsel %vm265_vm0, %v279_v7, 0.0  ;;  %v268_v15 = vadd.f32 %v267_v13, %v266_v8  ;;  %v286_v19 = vsel %vm265_vm0, %v281_v11, 0.0  ;;  %v255_v30 = vld [vmem:[#allocation11] sm:$0xff]  ;;  %v1289_v43 = vld [vmem:[#allocation13 + $0x38] sm:$0xff]  ;;  %v1288_v45 = vld [vmem:[#allocation13 + $0x30] sm:$0xff] }
  0x3f   :  { %333 = vmatpush.msra.mxu3 %v260_v2  ;;  %309 = vmatpush.msra.mxu0 %v260_v2  ;;  %v284_v18 = vsel %vm265_vm0, %v280_v10, 0.0  ;;  %v288_v24 = vsel %vm265_vm0, %v282_v12, 0.0  ;;  %v1293_v46 = vld [vmem:[#allocation13 + $0x58] sm:$0xff]  ;;  %v1287_v50 = vld [vmem:[#allocation13 + $0x28] sm:$0xff]  ;;  %v1292_v52 = vld [vmem:[#allocation13 + $0x50] sm:$0xff] }
  0x40   :  { %v285_v21 = vadd.f32 %v284_v18, %v283_v14  ;;  %v270_v22 = vadd.f32 %v269_v16, %v268_v15  ;;  %v1297_v47 = vld [vmem:[#allocation13 + $0x18] sm:$0xff]  ;;  %458 = vmatpush.bf16.msra.mxu2 %v1293_v46  ;;  %v1296_v53 = vld [vmem:[#allocation13 + $0x10] sm:$0xff]  ;;  %v1286_v54 = vld [vmem:[#allocation13 + $0x20] sm:$0xff]  ;;  %v402_v14 = vlaneseq }
  0x41   :  { %334 = vmatpush.msra.mxu3 %v259_v9  ;;  %310 = vmatpush.msra.mxu0 %v259_v9  ;;  %v1291_v56 = vld [vmem:[#allocation13 + $0x48] sm:$0xff]  ;;  %v1290_v60 = vld [vmem:[#allocation13 + $0x40] sm:$0xff] }
  0x42   :  { %v287_v25 = vadd.f32 %v286_v19, %v285_v21  ;;  %v272_v26 = vadd.f32 %v271_v20, %v270_v22  ;;  %v1295_v57 = vld [vmem:[#allocation13 + $0x8] sm:$0xff]  ;;  %v1294_v61 = vld [vmem:[#allocation13] sm:$0xff]  ;;  %v1914_v21 = vshrl.u32 %v402_v14, 7  ;;  %v616_v14 = vld [vmem:[#allocation17 + $0x50] sm:$0xff] }
  0x43   :  { %335 = vmatpush.msra.mxu3 %v258_v17  ;;  %311 = vmatpush.msra.mxu0 %v258_v17  ;;  %v263_v7 = vld [vmem:[%s2000_s5] sm:$0x1] }
  0x44   :  { %v289_v28 = vadd.f32 %v288_v24, %v287_v25  ;;  %v273_v29 = vrot.slane %v272_v26, 4  ;;  %459 = vmatpush.bf16.msra.mxu2 %v1292_v52  ;;  %v264_v11 = vld [vmem:[%s2001_s6] sm:$0x1]  ;;  %vm404_vm4 = vcmp.lt.s32.totalorder %v1914_v21, 7  ;;  %vm526_vm5 = vcmp.lt.s32.totalorder %v1914_v21, 1 }
  0x45   :  { %336 = vmatpush.msra.mxu3 %v257_v23  ;;  %312 = vmatpush.msra.mxu0 %v257_v23 }
  0x46   :  { %v290_v31 = vrot.slane %v289_v28, 4  ;;  %v274_v32 = vadd.f32 %v273_v29, %v272_v26 }
  0x47   :  { %337 = vmatpush.msra.mxu3 %v256_v27  ;;  %313 = vmatpush.msra.mxu0 %v256_v27 }
  0x48   :  { %v291_v33 = vadd.f32 %v290_v31, %v289_v28  ;;  %v275_v34 = vrot.slane %v274_v32, 2  ;;  %460 = vmatpush.bf16.msra.mxu2 %v1291_v56  ;;  %v383_v31 = vld [vmem:[#allocation7] sm:$0xff] }
  0x49   :  { %338 = vmatpush.msra.mxu3 %v255_v30  ;;  %314 = vmatpush.msra.mxu0 %v255_v30 }
  0x4a   :  { %v292_v35 = vrot.slane %v291_v33, 2  ;;  %v276_v36 = vadd.f32 %v275_v34, %v274_v32  ;;  %v384_v32 = vld [vmem:[#allocation7 + $0x8] sm:$0xff] }
  0x4b   :  { %507 = vmatpush.bf16.msrb.mxu3 %v1289_v43  ;;  %579 = vmatpush.bf16.msrb.mxu0 %v1297_v47 }
  0x4c   :  { %v293_v37 = vadd.f32 %v292_v35, %v291_v33  ;;  %v277_v38 = vrot.slane %v276_v36, 1  ;;  %461 = vmatpush.bf16.msra.mxu2 %v1290_v60 }
  0x4e   :  { %v294_v39 = vrot.slane %v293_v37, 1  ;;  %v278_v40 = vadd.f32 %v277_v38, %v276_v36  ;;  %v379_v36 = vld [vmem:[#allocation5] sm:$0xff] }
  0x4f   :  { %508 = vmatpush.bf16.msrb.mxu3 %v1288_v45  ;;  %580 = vmatpush.bf16.msrb.mxu0 %v1296_v53  ;;  %v385_v53 = vld [vmem:[#allocation7 + $0x10] sm:$0xff] }
  0x50   :  { %v295_v41 = vadd.f32 %v294_v39, %v293_v37  ;;  %1116 = vmatmul.msk.f32.vlgmr.msra.gmra.mxu0 %vm265_vm0, %v278_v40  ;;  %v380_v37 = vld [vmem:[#allocation5 + $0x8] sm:$0xff] }
  0x52   :  { %1117 = vmatmul.msk.f32.vlgmr.msra.gmra.mxu3 %vm265_vm0, %v295_v41 }
  0x53   :  { %509 = vmatpush.bf16.msrb.mxu3 %v1287_v50  ;;  %581 = vmatpush.bf16.msrb.mxu0 %v1295_v57  ;;  %v381_v57 = vld [vmem:[#allocation5 + $0x10] sm:$0xff] }
  0x57   :  { %510 = vmatpush.bf16.msrb.mxu3 %v1286_v54  ;;  %582 = vmatpush.bf16.msrb.mxu0 %v1294_v61  ;;  %v386_v54 = vld [vmem:[#allocation7 + $0x18] sm:$0xff] }
  0xcd   :  { %v316_v42 = vpop.f32.mrf.mxu0 }
  0xce   :  { %v319_v44 = vmul.f32 0.001953125, %v316_v42 }
  0xd0   :  { %v344_v48 = vmul.f32 %v319_v44, %v319_v44 }
  0xd5   :  { %v340_v49 = vpop.f32.mrf.mxu3 }
  0xd6   :  { %v343_v51 = vmul.f32 0.001953125, %v340_v49 }
  0xd8   :  { %v345_v55 = vsub.f32 %v343_v51, %v344_v48 }
  0xda   :  { %v346_v58 = vmax.f32 %v345_v55, 0.0 }
  0xdc   :  { %v347_v59 = vadd.f32 1e-05, %v346_v58  ;;  %v382_v58 = vld [vmem:[#allocation5 + $0x18] sm:$0xff] }
  0xde   :  { %1346 = vrsqrt.f32 %v347_v59  ;;  %vm354_vm2 = vweird.f32 %v347_v59 }
  0xe4   :  { %v1347_v62 = vpop.eup %1346 }
  0xe5   :  { %v349_v63 = vmul.f32 %v1347_v62, %v347_v59  ;;  %vm355_vm1 = vweird.f32 %v1347_v62 }
  0xe6   :  { %vm356_vm3 = vmor %vm354_vm2, %vm355_vm1 }
  0xe7   :  { %v350_v0 = vmul.f32 %v1347_v62, %v349_v63 }
  0xe9   :  { %v351_v1 = vmul.f32 0.5, %v350_v0 }
  0xeb   :  { %v352_v2 = vsub.f32 1.5, %v351_v1 }
  0xed   :  { %v353_v8 = vmul.f32 %v1347_v62, %v352_v2 }
  0xef   :  { %v357_v9 = vsel %vm356_vm3, %v1347_v62, %v353_v8  ;;  %v621_v8 = vld [vmem:[#allocation17 + $0x78] sm:$0xff] }
  0xf0   :  { %v358_v10 = vmul.f32 %v357_v9, %v263_v7  ;;  %646 = vmatpush.msra.mxu1 %v621_v8  ;;  %667 = vmatpush.msrb.mxu2 %v621_v8  ;;  %v620_v9 = vld [vmem:[#allocation17 + $0x70] sm:$0xff] }
  0xf2   :  { %v359_v12 = vmul.f32 %v358_v10, %v319_v44  ;;  %v362_v13 = vperm.slane %v358_v10, 0  ;;  %647 = vmatpush.msra.mxu1 %v620_v9  ;;  %668 = vmatpush.msrb.mxu2 %v620_v9  ;;  %v619_v10 = vld [vmem:[#allocation17 + $0x68] sm:$0xff] }
  0xf4   :  { %v360_v15 = vsub.f32 %v264_v11, %v359_v12  ;;  %v364_v16 = vmul.f32 %v362_v13, %v1874_v3  ;;  %v365_v18 = vmul.f32 %v362_v13, %v1876_v4  ;;  %v366_v19 = vmul.f32 %v362_v13, %v1878_v5  ;;  %648 = vmatpush.msra.mxu1 %v619_v10  ;;  %v618_v11 = vld [vmem:[#allocation17 + $0x60] sm:$0xff]  ;;  %v617_v12 = vld [vmem:[#allocation17 + $0x58] sm:$0xff] }
  0xf5   :  { %v367_v20 = vmul.f32 %v362_v13, %v1880_v6  ;;  %669 = vmatpush.msrb.mxu2 %v619_v10 }
  0xf6   :  { %v369_v17 = vperm.slane %v360_v15, 0  ;;  %649 = vmatpush.msra.mxu1 %v618_v11 }
  0xf7   :  { %670 = vmatpush.msrb.mxu2 %v618_v11 }
  0xf8   :  { %v371_v22 = vadd.f32 %v369_v17, %v364_v16  ;;  %v372_v23 = vadd.f32 %v369_v17, %v365_v18  ;;  %v373_v24 = vadd.f32 %v369_v17, %v366_v19  ;;  %v374_v25 = vadd.f32 %v369_v17, %v367_v20  ;;  %650 = vmatpush.msra.mxu1 %v617_v12  ;;  %v615_v16 = vld [vmem:[#allocation17 + $0x48] sm:$0xff]  ;;  %v614_v17 = vld [vmem:[#allocation17 + $0x40] sm:$0xff]  ;;  %v613_v18 = vld [vmem:[#allocation17 + $0x38] sm:$0xff] }
  0xf9   :  { %671 = vmatpush.msrb.mxu2 %v617_v12  ;;  %v612_v20 = vld [vmem:[#allocation17 + $0x30] sm:$0xff]  ;;  %v1305_v12 = vld [vmem:[#allocation19 + $0x78] sm:$0xff] }
  0xfa   :  { %v375_v26 = vmax.f32 %v371_v22, 0.0  ;;  %v376_v27 = vmax.f32 %v372_v23, 0.0  ;;  %v377_v28 = vmax.f32 %v373_v24, 0.0  ;;  %v378_v29 = vmax.f32 %v374_v25, 0.0  ;;  %651 = vmatpush.msra.mxu1 %v616_v14  ;;  %v611_v22 = vld [vmem:[#allocation17 + $0x28] sm:$0xff]  ;;  %v610_v24 = vld [vmem:[#allocation17 + $0x20] sm:$0xff]  ;;  %896 = vmatpush.bf16.msra.mxu0 %v1305_v12 }
  0xfb   :  { %672 = vmatpush.msrb.mxu2 %v616_v14  ;;  %v1313_v14 = vld [vmem:[#allocation19 + $0xb8] sm:$0xff] }
  0xfc   :  { %v387_v30 = vpack.c.bf16 %v376_v27, %v375_v26  ;;  %v398_v33 = vrot.slane %v375_v26, 1  ;;  %v399_v34 = vrot.slane %v376_v27, 1  ;;  %v400_v35 = vrot.slane %v377_v28, 1  ;;  %652 = vmatpush.msra.mxu1 %v615_v16  ;;  %829 = vmatpush.bf16.msra.mxu3 %v1313_v14 }
  0xfd   :  { %v522_v38 = vrot.slane %v375_v26, 7  ;;  %v523_v39 = vrot.slane %v376_v27, 7  ;;  %v525_v40 = vrot.slane %v378_v29, 7  ;;  %v401_v51 = vrot.slane %v378_v29, 1  ;;  %673 = vmatpush.msrb.mxu2 %v615_v16  ;;  %v609_v26 = vld [vmem:[#allocation17 + $0x18] sm:$0xff]  ;;  %v1303_v16 = vld [vmem:[#allocation19 + $0x68] sm:$0xff] }
  0xfe   :  { %1152 = vmatmul.msk.bf16.vlgmr.msrb.gmra.mxu3 %vm265_vm0, %v387_v30  ;;  %v406_v41 = vsel %vm404_vm4, %v399_v34, %v400_v35  ;;  %v407_v42 = vsel %vm404_vm4, %v398_v33, %v399_v34  ;;  %v524_v52 = vrot.slane %v377_v28, 7  ;;  %v388_v61 = vpack.c.bf16 %v378_v29, %v377_v28  ;;  %653 = vmatpush.msra.mxu1 %v614_v17  ;;  %v608_v28 = vld [vmem:[#allocation17 + $0x10] sm:$0xff]  ;;  %v607_v29 = vld [vmem:[#allocation17 + $0x8] sm:$0xff] }
  0xff   :  { %v409_v43 = vmul.f32 %v407_v42, %v383_v31  ;;  %v410_v44 = vmul.f32 %v406_v41, %v384_v32  ;;  %v529_v45 = vsel %vm526_vm5, %v522_v38, %v523_v39  ;;  %v530_v46 = vsel %vm526_vm5, %v525_v40, %v522_v38  ;;  %674 = vmatpush.msrb.mxu2 %v614_v17  ;;  %v606_v31 = vld [vmem:[#allocation17] sm:$0xff]  ;;  %v1312_v17 = vld [vmem:[#allocation19 + $0xb0] sm:$0xff] }
 0x100   :  { %v531_v47 = vmul.f32 %v530_v46, %v379_v36  ;;  %v532_v48 = vmul.f32 %v529_v45, %v380_v37  ;;  %v405_v55 = vsel %vm404_vm4, %v400_v35, %v401_v51  ;;  %v408_v56 = vsel %vm404_vm4, %v401_v51, %v398_v33  ;;  %654 = vmatpush.msra.mxu1 %v613_v18 }
 0x101   :  { %v413_v49 = vpack.c.bf16 %v410_v44, %v409_v43  ;;  %v527_v59 = vsel %vm526_vm5, %v524_v52, %v525_v40  ;;  %v528_v60 = vsel %vm526_vm5, %v523_v39, %v524_v52  ;;  %v411_v62 = vmul.f32 %v405_v55, %v385_v53  ;;  %675 = vmatpush.msrb.mxu2 %v613_v18  ;;  %v1344_v39 = vld [vmem:[#allocation14] ss:$0 sm:$0xff]  ;;  %v1320_v18 = vld [vmem:[#allocation19 + $0x30] sm:$0xff] }
 0x102   :  { %v535_v50 = vpack.c.bf16 %v532_v48, %v531_v47  ;;  %v412_v63 = vmul.f32 %v408_v56, %v386_v54  ;;  %v533_v0 = vmul.f32 %v528_v60, %v381_v57  ;;  %v534_v1 = vmul.f32 %v527_v59, %v382_v58  ;;  %655 = vmatpush.msra.mxu1 %v612_v20 }
 0x103   :  { %1134 = vmatmul.msk.bf16.vlgmr.msra.gmra.mxu2 %vm265_vm0, %v413_v49  ;;  %830 = vmatpush.bf16.msra.mxu3 %v1312_v17 }
 0x104   :  { %1170 = vmatmul.msk.bf16.vlgmr.msrb.gmra.mxu0 %vm265_vm0, %v535_v50  ;;  %v414_v2 = vpack.c.bf16 %v412_v63, %v411_v62  ;;  %v536_v7 = vpack.c.bf16 %v534_v1, %v533_v0  ;;  %676 = vmatpush.msrb.mxu2 %v612_v20  ;;  %v1311_v20 = vld [vmem:[#allocation19 + $0xa8] sm:$0xff] }
 0x105   :  { %656 = vmatpush.msra.mxu1 %v611_v22 }
 0x106   :  { %677 = vmatpush.msrb.mxu2 %v611_v22  ;;  %v1319_v22 = vld [vmem:[#allocation19 + $0x28] sm:$0xff] }
 0x107   :  { %657 = vmatpush.msra.mxu1 %v610_v24  ;;  %831 = vmatpush.bf16.msra.mxu3 %v1311_v20 }
 0x108   :  { %678 = vmatpush.msrb.mxu2 %v610_v24  ;;  %v1301_v24 = vld [vmem:[#allocation19 + $0x58] sm:$0xff] }
 0x109   :  { %658 = vmatpush.msra.mxu1 %v609_v26 }
 0x10a   :  { %679 = vmatpush.msrb.mxu2 %v609_v26  ;;  %v1310_v26 = vld [vmem:[#allocation19 + $0xa0] sm:$0xff] }
 0x10b   :  { %659 = vmatpush.msra.mxu1 %v608_v28  ;;  %832 = vmatpush.bf16.msra.mxu3 %v1310_v26 }
 0x10c   :  { %680 = vmatpush.msrb.mxu2 %v608_v28  ;;  %v1325_v28 = vld [vmem:[#allocation20 + $0x18] sm:$0xff] }
 0x10d   :  { %660 = vmatpush.msra.mxu1 %v607_v29 }
 0x10e   :  { %1153 = vmatmul.msk.bf16.gmra.mxu3 %vm265_vm0, %v388_v61  ;;  %681 = vmatpush.msrb.mxu2 %v607_v29 }
 0x10f   :  { %661 = vmatpush.msra.mxu1 %v606_v31 }
 0x110   :  { %682 = vmatpush.msrb.mxu2 %v606_v31 }
 0x112   :  { %1068 = vmatpush.bf16.msra.mxu2 %v1325_v28 }
 0x113   :  { %1135 = vmatmul.msk.bf16.gmra.mxu2 %vm265_vm0, %v414_v2 }
 0x114   :  { %1171 = vmatmul.msk.bf16.gmra.mxu0 %vm265_vm0, %v536_v7 }
 0x181   :  { %v512_v13 = vpop.f32.mrf.mxu3  ;;  %v584_v15 = vpop.f32.mrf.mxu0 }
 0x186   :  { %v463_v19 = vpop.f32.mrf.mxu2 }
 0x187   :  { %v513_v33 = vadd.f32 %v512_v13, %v463_v19  ;;  %v1304_v13 = vld [vmem:[#allocation19 + $0x70] sm:$0xff]  ;;  %v1302_v19 = vld [vmem:[#allocation19 + $0x60] sm:$0xff] }
 0x188   :  { %897 = vmatpush.bf16.msra.mxu0 %v1304_v13 }
 0x189   :  { %v514_v23 = vpop.f32.mrf.mxu3  ;;  %v586_v25 = vpop.f32.mrf.mxu0  ;;  %v594_v38 = vadd.f32 %v584_v15, %v513_v33  ;;  %v1321_v15 = vld [vmem:[#allocation19 + $0x38] sm:$0xff] }
 0x18a   :  { %993 = vmatpush.bf16.msrb.mxu1 %v1321_v15  ;;  %v1309_v33 = vld [vmem:[#allocation19 + $0x98] sm:$0xff] }
 0x18b   :  { %v1942_v42 = vadd.f32 %v1344_v39, %v594_v38  ;;  %833 = vmatpush.bf16.msra.mxu3 %v1309_v33  ;;  %v1308_v38 = vld [vmem:[#allocation19 + $0x90] sm:$0xff] }
 0x18c   :  { %898 = vmatpush.bf16.msra.mxu0 %v1303_v16 }
 0x18d   :  { %v633_v49 = vmul.f32 %v1942_v42, %v1942_v42 }
 0x18e   :  { %v465_v27 = vpop.f32.mrf.mxu2  ;;  %994 = vmatpush.bf16.msrb.mxu1 %v1320_v18  ;;  %v727_v18 = vld [vmem:[#allocation10] sm:$0xff] }
 0x18f   :  { %v515_v30 = vadd.f32 %v514_v23, %v465_v27  ;;  %v1318_v27 = vld [vmem:[#allocation19 + $0x20] sm:$0xff]  ;;  %834 = vmatpush.bf16.msra.mxu3 %v1308_v38  ;;  %v730_v38 = vld [vmem:[#allocation10 + $0x18] sm:$0xff] }
 0x190   :  { %899 = vmatpush.bf16.msra.mxu0 %v1302_v19 }
 0x191   :  { %v517_v32 = vpop.f32.mrf.mxu3  ;;  %v589_v34 = vpop.f32.mrf.mxu0  ;;  %v595_v36 = vadd.f32 %v586_v25, %v515_v30  ;;  %v1300_v30 = vld [vmem:[#allocation19 + $0x50] sm:$0xff] }
 0x192   :  { %995 = vmatpush.bf16.msrb.mxu1 %v1319_v22 }
 0x193   :  { %v1940_v41 = vadd.f32 %v1344_v39, %v595_v36  ;;  %v1299_v36 = vld [vmem:[#allocation19 + $0x48] sm:$0xff] }
 0x194   :  { %900 = vmatpush.bf16.msra.mxu0 %v1301_v24 }
 0x195   :  { %v634_v46 = vmul.f32 %v1940_v41, %v1940_v41  ;;  %v624_v50 = vadd.f32 %v1940_v41, %v1942_v42 }
 0x196   :  { %v468_v35 = vpop.f32.mrf.mxu2  ;;  %996 = vmatpush.bf16.msrb.mxu1 %v1318_v27 }
 0x197   :  { %v518_v37 = vadd.f32 %v517_v32, %v468_v35  ;;  %v637_v53 = vadd.f32 %v634_v46, %v633_v49  ;;  %v1324_v35 = vld [vmem:[#allocation20 + $0x10] sm:$0xff]  ;;  %v1322_v49 = vld [vmem:[#allocation20] sm:$0xff] }
 0x198   :  { %901 = vmatpush.bf16.msra.mxu0 %v1300_v30  ;;  %1069 = vmatpush.bf16.msra.mxu2 %v1324_v35 }
 0x199   :  { %v596_v40 = vadd.f32 %v589_v34, %v518_v37  ;;  %v519_v44 = vpop.f32.mrf.mxu3  ;;  %v591_v48 = vpop.f32.mrf.mxu0  ;;  %v1317_v34 = vld [vmem:[#allocation19 + $0x18] sm:$0xff] }
 0x19a   :  { %997 = vmatpush.bf16.msrb.mxu1 %v1317_v34 }
 0x19b   :  { %v1944_v43 = vadd.f32 %v1344_v39, %v596_v40 }
 0x19c   :  { %902 = vmatpush.bf16.msra.mxu0 %v1299_v36 }
 0x19d   :  { %v635_v51 = vmul.f32 %v1944_v43, %v1944_v43  ;;  %v625_v54 = vadd.f32 %v624_v50, %v1944_v43  ;;  %v1306_v50 = vld [vmem:[#allocation19 + $0x80] sm:$0xff] }
 0x19e   :  { %v470_v45 = vpop.f32.mrf.mxu2 }
 0x19f   :  { %v520_v47 = vadd.f32 %v519_v44, %v470_v45  ;;  %v638_v56 = vadd.f32 %v637_v53, %v635_v51  ;;  %v1323_v44 = vld [vmem:[#allocation20 + $0x8] sm:$0xff]  ;;  %v1298_v45 = vld [vmem:[#allocation19 + $0x40] sm:$0xff] }
 0x1a0   :  { %1070 = vmatpush.bf16.msra.mxu2 %v1323_v44  ;;  %903 = vmatpush.bf16.msra.mxu0 %v1298_v45  ;;  %v1314_v51 = vld [vmem:[#allocation19] sm:$0xff]  ;;  %v725_v44 = vld [vmem:[#allocation8 + $0x10] sm:$0xff]  ;;  %v726_v45 = vld [vmem:[#allocation8 + $0x18] sm:$0xff] }
 0x1a1   :  { %v597_v52 = vadd.f32 %v591_v48, %v520_v47  ;;  %v1307_v47 = vld [vmem:[#allocation19 + $0x88] sm:$0xff] }
 0x1a2   :  { %v1315_v48 = vld [vmem:[#allocation19 + $0x8] sm:$0xff]  ;;  %835 = vmatpush.bf16.msra.mxu3 %v1307_v47 }
 0x1a3   :  { %v1955_v55 = vadd.f32 %v1344_v39, %v597_v52  ;;  %v1316_v39 = vld [vmem:[#allocation19 + $0x10] sm:$0xff]  ;;  %v1024_v52 = vpack.c.bf16 %v1876_v4, %v1874_v3  ;;  %v623_v4 = vld [vmem:[#allocation16] sm:$0x1] }
 0x1a4   :  { %998 = vmatpush.bf16.msrb.mxu1 %v1316_v39  ;;  %1071 = vmatpush.bf16.msra.mxu2 %v1322_v49 }
 0x1a5   :  { %v636_v57 = vmul.f32 %v1955_v55, %v1955_v55  ;;  %v626_v58 = vadd.f32 %v625_v54, %v1955_v55 }
 0x1a6   :  { %836 = vmatpush.bf16.msra.mxu3 %v1306_v50 }
 0x1a7   :  { %v627_v59 = vrot.slane %v626_v58, 4  ;;  %v639_v60 = vadd.f32 %v638_v56, %v636_v57 }
 0x1a8   :  { %999 = vmatpush.bf16.msrb.mxu1 %v1315_v48 }
 0x1a9   :  { %v628_v61 = vadd.f32 %v627_v59, %v626_v58  ;;  %v640_v62 = vrot.slane %v639_v60, 4  ;;  %v622_v59 = vld [vmem:[%s2005_s10] sm:$0x1]  ;;  %s1719_s10 = smov [#allocation23]  }
 0x1aa   :  { %s1095_s18 = sshll.u32 %s1719_s10, 4  ;;  %s1096_s18 = int_to_ptr.vmem [resolvable:$true] %s1095_s18 }
 0x1ab   :  { %v629_v63 = vrot.slane %v628_v61, 2  ;;  %v641_v0 = vadd.f32 %v640_v62, %v639_v60  ;;  %v1025_v62 = vpack.c.bf16 %v1880_v6, %v1878_v5 }
 0x1ac   :  { %1000 = vmatpush.bf16.msrb.mxu1 %v1314_v51 }
 0x1ad   :  { %v630_v1 = vadd.f32 %v629_v63, %v628_v61  ;;  %v642_v2 = vrot.slane %v641_v0, 2 }
 0x1af   :  { %v631_v7 = vrot.slane %v630_v1, 1  ;;  %v643_v8 = vadd.f32 %v642_v2, %v641_v0 }
 0x1b1   :  { %v632_v9 = vadd.f32 %v631_v7, %v630_v1  ;;  %v644_v10 = vrot.slane %v643_v8, 1 }
 0x1b3   :  { %662 = vmatmul.f32.vlgmr.msra.gmra.mxu1 %v632_v9  ;;  %v645_v11 = vadd.f32 %v644_v10, %v643_v8 }
 0x1b5   :  { %683 = vmatmul.f32.vlgmr.msrb.gmra.mxu2 %v645_v11 }
 0x1bd   :  { %1284 = vmatmul.msk.bf16.vlgmr.msra.gmra.mxu2 %vm265_vm0, %v1024_v52 }
 0x1cd   :  { %1285 = vmatmul.msk.bf16.gmra.mxu2 %vm265_vm0, %v1025_v62 }
 0x230   :  { %v663_v23 = vpop.f32.mrf.mxu1 }
 0x231   :  { %v666_v25 = vmul.f32 0.001953125, %v663_v23  ;;  %v723_v23 = vld [vmem:[#allocation8] sm:$0xff] }
 0x233   :  { %v688_v31 = vmul.f32 %v666_v25, %v666_v25 }
 0x238   :  { %v684_v29 = vpop.f32.mrf.mxu2 }
 0x239   :  { %v687_v32 = vmul.f32 0.001953125, %v684_v29 }
 0x23b   :  { %v689_v37 = vsub.f32 %v687_v32, %v688_v31 }
 0x23d   :  { %v690_v40 = vmax.f32 %v689_v37, 0.0  ;;  %v729_v37 = vld [vmem:[#allocation10 + $0x10] sm:$0xff] }
 0x23f   :  { %v691_v46 = vadd.f32 1e-05, %v690_v40 }
 0x241   :  { %1348 = vrsqrt.f32 %v691_v46  ;;  %vm698_vm7 = vweird.f32 %v691_v46 }
 0x247   :  { %v1349_v53 = vpop.eup %1348 }
 0x248   :  { %v693_v54 = vmul.f32 %v1349_v53, %v691_v46  ;;  %vm699_vm6 = vweird.f32 %v1349_v53 }
 0x249   :  { %vm700_vm8 = vmor %vm698_vm7, %vm699_vm6 }
 0x24a   :  { %v694_v56 = vmul.f32 %v1349_v53, %v693_v54 }
 0x24c   :  { %v695_v57 = vmul.f32 0.5, %v694_v56 }
 0x24e   :  { %v696_v58 = vsub.f32 1.5, %v695_v57 }
 0x250   :  { %v697_v60 = vmul.f32 %v1349_v53, %v696_v58  ;;  %v1073_v58 = vpop.f32.mrf.mxu2 }
 0x252   :  { %v701_v61 = vsel %vm700_vm8, %v1349_v53, %v697_v60 }
 0x253   :  { %v702_v3 = vmul.f32 %v701_v61, %v622_v59  ;;  %v1345_v61 = vld [vmem:[#allocation22] ss:$0 sm:$0xff] }
 0x255   :  { %v703_v63 = vmul.f32 %v702_v3, %v666_v25  ;;  %v706_v0 = vperm.slane %v702_v3, 0 }
 0x257   :  { %v704_v1 = vsub.f32 %v623_v4, %v703_v63  ;;  %v708_v2 = vmul.f32 %v706_v0, %v1942_v42  ;;  %v709_v8 = vmul.f32 %v706_v0, %v1940_v41  ;;  %v710_v9 = vmul.f32 %v706_v0, %v1944_v43  ;;  %v728_v42 = vld [vmem:[#allocation10 + $0x8] sm:$0xff] }
 0x258   :  { %v711_v10 = vmul.f32 %v706_v0, %v1955_v55  ;;  %v724_v41 = vld [vmem:[#allocation8 + $0x8] sm:$0xff] }
 0x259   :  { %v713_v7 = vperm.slane %v704_v1, 0 }
 0x25b   :  { %v715_v11 = vadd.f32 %v713_v7, %v708_v2  ;;  %v716_v12 = vadd.f32 %v713_v7, %v709_v8  ;;  %v717_v13 = vadd.f32 %v713_v7, %v710_v9  ;;  %v718_v14 = vadd.f32 %v713_v7, %v711_v10  ;;  %v1075_v2 = vpop.f32.mrf.mxu2 }
 0x25d   :  { %v719_v15 = vmax.f32 %v715_v11, 0.0  ;;  %v720_v5 = vmax.f32 %v716_v12, 0.0  ;;  %v721_v6 = vmax.f32 %v717_v13, 0.0  ;;  %v722_v16 = vmax.f32 %v718_v14, 0.0 }
 0x25f   :  { %v731_v17 = vpack.c.bf16 %v720_v5, %v719_v15  ;;  %v750_v19 = vrot.slane %v719_v15, 1  ;;  %v751_v20 = vrot.slane %v720_v5, 1  ;;  %v752_v22 = vrot.slane %v721_v6, 1 }
 0x260   :  { %v915_v24 = vrot.slane %v719_v15, 7  ;;  %v916_v43 = vrot.slane %v720_v5, 7  ;;  %v918_v25 = vrot.slane %v722_v16, 7  ;;  %v753_v35 = vrot.slane %v722_v16, 1 }
 0x261   :  { %904 = vmatmul.bf16.vlgmr.msra.gmra.mxu0 %v731_v17  ;;  %v755_v55 = vsel %vm404_vm4, %v751_v20, %v752_v22  ;;  %v756_v26 = vsel %vm404_vm4, %v750_v19, %v751_v20  ;;  %v917_v36 = vrot.slane %v721_v6, 7  ;;  %v732_v48 = vpack.c.bf16 %v722_v16, %v721_v6 }
 0x262   :  { %v758_v27 = vmul.f32 %v756_v26, %v727_v18  ;;  %v759_v28 = vmul.f32 %v755_v55, %v728_v42  ;;  %v921_v29 = vsel %vm526_vm5, %v915_v24, %v916_v43  ;;  %v922_v30 = vsel %vm526_vm5, %v918_v25, %v915_v24 }
 0x263   :  { %v923_v31 = vmul.f32 %v922_v30, %v723_v23  ;;  %v924_v32 = vmul.f32 %v921_v29, %v724_v41  ;;  %v754_v39 = vsel %vm404_vm4, %v752_v22, %v753_v35  ;;  %v757_v40 = vsel %vm404_vm4, %v753_v35, %v750_v19  ;;  %v1078_v15 = vpop.f32.mrf.mxu2 }
 0x264   :  { %v762_v33 = vpack.c.bf16 %v759_v28, %v758_v27  ;;  %v919_v46 = vsel %vm526_vm5, %v917_v36, %v918_v25  ;;  %v920_v47 = vsel %vm526_vm5, %v916_v43, %v917_v36  ;;  %v760_v49 = vmul.f32 %v754_v39, %v729_v37 }
 0x265   :  { %v927_v34 = vpack.c.bf16 %v924_v32, %v923_v31  ;;  %v761_v50 = vmul.f32 %v757_v40, %v730_v38  ;;  %v925_v51 = vmul.f32 %v920_v47, %v725_v44  ;;  %v926_v52 = vmul.f32 %v919_v46, %v726_v45 }
 0x266   :  { %837 = vmatmul.bf16.vlgmr.msra.gmra.mxu3 %v762_v33 }
 0x267   :  { %1001 = vmatmul.bf16.vlgmr.msrb.gmra.mxu1 %v927_v34  ;;  %v763_v53 = vpack.c.bf16 %v761_v50, %v760_v49  ;;  %v928_v54 = vpack.c.bf16 %v926_v52, %v925_v51 }
 0x26b   :  { %v1080_v22 = vpop.f32.mrf.mxu2 }
 0x271   :  { %909 = vmatmul.bf16.gmra.mxu0 %v732_v48 }
 0x276   :  { %842 = vmatmul.bf16.gmra.mxu3 %v763_v53 }
 0x277   :  { %1006 = vmatmul.bf16.gmra.mxu1 %v928_v54 }
 0x2de   :  { %v905_v56 = vpop.f32.mrf.mxu0 }
 0x2e4   :  { %v1002_v57 = vpop.f32.mrf.mxu1 }
 0x2e6   :  { %v907_v4 = vpop.f32.mrf.mxu0 }
 0x2e9   :  { %v838_v59 = vpop.f32.mrf.mxu3 }
 0x2ea   :  { %v906_v60 = vadd.f32 %v905_v56, %v838_v59 }
 0x2ec   :  { %v1012_v3 = vadd.f32 %v1002_v57, %v906_v60  ;;  %v1004_v62 = vpop.f32.mrf.mxu1 }
 0x2ee   :  { %v1020_v21 = vadd.f32 %v1345_v61, %v1012_v3  ;;  %v910_v9 = vpop.f32.mrf.mxu0 }
 0x2f0   :  { %v1083_v63 = vadd.f32 %v1073_v58, %v1020_v21 }
 0x2f1   :  { %v840_v0 = vpop.f32.mrf.mxu3 }
 0x2f2   :  { %1087 = vst [vmem:[#allocation23] sm:$0xff] %v1083_v63  ;;  %v908_v1 = vadd.f32 %v907_v4, %v840_v0 }
 0x2f4   :  { %v1013_v7 = vadd.f32 %v1004_v62, %v908_v1  ;;  %v1007_v11 = vpop.f32.mrf.mxu1 }
 0x2f6   :  { %v1021_v8 = vadd.f32 %v1345_v61, %v1013_v7  ;;  %v912_v16 = vpop.f32.mrf.mxu0 }
 0x2f8   :  { %v1084_v10 = vadd.f32 %v1075_v2, %v1021_v8 }
 0x2f9   :  { %v843_v12 = vpop.f32.mrf.mxu3 }
 0x2fa   :  { %1088 = vst [vmem:[#allocation23 + $0x8] sm:$0xff] %v1084_v10  ;;  %v911_v13 = vadd.f32 %v910_v9, %v843_v12 }
 0x2fc   :  { %v1014_v14 = vadd.f32 %v1007_v11, %v911_v13  ;;  %v1009_v42 = vpop.f32.mrf.mxu1 }
 0x2fe   :  { %v1022_v5 = vadd.f32 %v1345_v61, %v1014_v14 }
 0x300   :  { %v1085_v6 = vadd.f32 %v1078_v15, %v1022_v5 }
 0x301   :  { %v845_v17 = vpop.f32.mrf.mxu3 }
 0x302   :  { %1089 = vst [vmem:[#allocation23 + $0x10] sm:$0xff] %v1085_v6  ;;  %v913_v18 = vadd.f32 %v912_v16, %v845_v17 }
 0x304   :  { %v1015_v19 = vadd.f32 %v1009_v42, %v913_v18 }
 0x306   :  { %v1023_v20 = vadd.f32 %v1345_v61, %v1015_v19 }
 0x308   :  { %v1086_v23 = vadd.f32 %v1080_v22, %v1023_v20 }
 0x30a   :  { %1090 = vst [vmem:[#allocation23 + $0x18] sm:$0xff] %v1086_v23 }
 0x30b   :  { %1103 = dma.vmem_to_hbm [thread:$0]  %s1096_s18, 512, %s1098_s3, [#allocation4], %s1703_s29, %s1703_s29, %s1704_s30  }
 0x30c   :  { %1700 = dma.done.wait [#allocation4], 512  }
 0x30d   :  { %1701 = vsyncadd [#allocation4], 4294966784 }
 0x30e   :  { %1108 = vsyncpa [#allocation3], 1 }
 0x30f   :  { %1109 = vsyncpa [#allocation6], 1 }
 0x310   :  { %1110 = vsyncpa [#allocation9], 1 }
 0x311   :  { %1111 = vsyncpa [#allocation12], 1 }
 0x312   :  { %1112 = vsyncpa [#allocation15], 1 }
 0x313   :  { %1113 = vsyncpa [#allocation18], 1 }
 0x314   :  { %1114 = vsyncpa [#allocation21], 1 }
 0x315   :  { %1115 = vsyncpa [#allocation4], 1 }

</bundles_post_ra>
